<compile_context>
chip_gen: v7x
topology: tpu7x:2x2x1
jax: 0.10.0
libtpu: 0.0.40
codegen_flags: <defaults>
</compile_context>

<pallas_src>
import functools

import jax
import jax.numpy as jnp
from jax.experimental import pallas as pl
from jax.experimental.pallas import tpu as pltpu


def _shift_flat(m, s):
    """out[:, i] = m[:, i + s] with zero fill outside [0, HW).  `s` static."""
    tn, hw = m.shape
    if s == 0:
        return m
    if abs(s) >= hw:
        return jnp.zeros_like(m)
    if s > 0:
        return jnp.concatenate([m[:, s:], jnp.zeros((tn, s), m.dtype)], axis=1)
    return jnp.concatenate([jnp.zeros((tn, -s), m.dtype), m[:, :hw + s]], axis=1)


def _spatial_attention_kernel(w_ref, x_ref, o_ref, *, K, P, H, W, CC):
    # w_ref : (2*K*K,) f32 conv weights in SMEM, index = cin*K*K + ky*K + kx
    # x_ref : (TN, C, HW) VMEM input block  (HW = H*W on lanes -> dense)
    # o_ref : (TN, C, HW) VMEM output block
    TN, C, HW = x_ref.shape
    n_chunks = C // CC

    # ---- Channel reduction, chunked over C: only two (TN, HW) f32
    # accumulators (+ one CC-row chunk) are live at a time; avoids
    # materializing a full-block f32 copy of x.
    ssum = jnp.zeros((TN, HW), jnp.float32)
    mmax = jnp.full((TN, HW), -jnp.inf, jnp.float32)
    for ci in range(n_chunks):
        chunk = x_ref[:, pl.ds(ci * CC, CC), :].astype(jnp.float32)  # (TN, CC, HW)
        ssum = ssum + jnp.sum(chunk, axis=1)
        mmax = jnp.maximum(mmax, jnp.max(chunk, axis=1))
    avg = ssum * jnp.float32(1.0 / C)

    # ---- Conv weights: read the 2*K*K SMEM scalars once, before the tap loop.
    w = [w_ref[i] for i in range(2 * K * K)]

    # Flat / column index of each lane (shape (1, HW); broadcast over TN).
    idx = jax.lax.broadcasted_iota(jnp.int32, (1, HW), 1)
    col = idx % W
    use_roll = (HW % 128 == 0)  # lane-aligned: one static vrot per tap

    # ---- KxK conv: one shifted, masked tap at a time on the weighted
    # (avg, max) combination.  Wrapped elements from the roll are exactly the
    # positions the zero-padding masks zero out, so roll == zero-fill shift.
    scale = jnp.zeros((TN, HW), jnp.float32)
    for ky in range(K):
        dy = ky - P
        for kx in range(K):
            dx = kx - P
            wa = w[0 * K * K + ky * K + kx]
            wm = w[1 * K * K + ky * K + kx]
            t = wa * avg + wm * mmax
            s = dy * W + dx
            if s != 0:
                if use_roll:
                    t = pltpu.roll(t, shift=(-s) % HW, axis=1)
                else:
                    t = _shift_flat(t, s)
            # Horizontal zero padding (mask columns whose neighbor is outside).
            if dx > 0:
                t = jnp.where(col < W - dx, t, 0.0)
            elif dx < 0:
                t = jnp.where(col >= -dx, t, 0.0)
            # Vertical zero padding (mask rows whose neighbor is outside).
            if dy > 0:
                t = jnp.where(idx < (H - dy) * W, t, 0.0)
            elif dy < 0:
                t = jnp.where(idx >= (-dy) * W, t, 0.0)
            scale = scale + t

    scale = jnp.maximum(scale, 0.0)   # mmcv ConvModule default ReLU
    attn = jax.nn.sigmoid(scale)      # (TN, HW) f32

    # ---- out = x * sigmoid(scale), chunked over C (streams through VMEM).
    for ci in range(n_chunks):
        sl = pl.ds(ci * CC, CC)
        xi = x_ref[:, sl, :].astype(jnp.float32)
        o_ref[:, sl, :] = (xi * attn[:, None, :]).astype(o_ref.dtype)


def _tpu_vmem_and_cores():
    """Best-effort (per-core VMEM bytes, TensorCores sharing the grid) query."""
    vmem_cap = 128 * 1024 * 1024
    num_cores = 1
    try:
        info = pltpu.get_tpu_info()
        vmem_cap = int(getattr(info, "vmem_capacity_bytes", vmem_cap))
        for attr in ("num_cores", "core_count", "num_tensorcores",
                     "tensorcores_per_chip"):
            v = getattr(info, attr, None)
            if v:
                num_cores = int(v)
                break
        else:
            # Heuristic: 64 MiB per-core VMEM => v7x-class chip with 2 TCs.
            if vmem_cap <= 64 * 1024 * 1024:
                num_cores = 2
    except Exception:
        pass  # interpret mode / older jax: keep safe defaults
    return vmem_cap, num_cores


def _pick_batch_tile(n, per_sample_bytes, max_block_bytes, min_grid_steps):
    """Largest divisor of n whose block fits the byte budget, keeping at least
    `min_grid_steps` grid steps when possible (for multi-TC pipelining)."""
    cap = max(1, min(n, max_block_bytes // max(per_sample_bytes, 1)))
    if min_grid_steps > 1:
        cap = min(cap, max(1, n // min_grid_steps))
    for tn in range(int(cap), 0, -1):
        if n % tn == 0:
            return tn
    return 1


def _pick_channel_chunk(c, max_chunk=16):
    for cc in range(min(c, max_chunk), 0, -1):
        if c % cc == 0:
            return cc
    return 1


def spatial_attention(x, conv_weight, kernel_size=3, *, max_block_bytes=8 << 20):
    """x: (N, C, H, W); conv_weight: (1, 2, K, K) (Conv2d(2, 1, K, bias=False))."""
    assert kernel_size in (3, 7), "kernel size must be 3 or 7"
    K = kernel_size
    P = 3 if kernel_size == 7 else 1
    N, C, H, W = x.shape
    HW = H * W
    # TODO(synk): empty-tensor (numel()==0) fast path of Max() is not represented;
    # the kernel requires N, C, H, W > 0.

    w_flat = conv_weight.reshape(-1).astype(jnp.float32)   # (2*K*K,) -> SMEM prefetch
    x_flat = x.reshape(N, C, HW)                           # lane-dense layout (free)

    itemsize = jnp.dtype(x.dtype).itemsize
    per_sample = C * HW * itemsize

    vmem_cap, num_cores = _tpu_vmem_and_cores()
    headroom = 16 << 20                                     # reduction/conv temporaries
    vmem_ceiling = max(vmem_cap - (8 << 20), 32 << 20)      # stay under physical VMEM

    # Block budget: the pipeline holds 2 input + 2 output buffers of one block.
    budget = min(max_block_bytes, max((vmem_ceiling - headroom) // 4, 1 << 20))
    if per_sample > budget:
        # TODO(synk): add a two-pass (C-split or HW-tiled-with-halo) fallback for
        # samples larger than the per-block VMEM budget.
        budget = per_sample

    # >=2 TCs share the "parallel" axis: keep >=4 steps so each core still
    # double-buffers; single-TC chips just take the largest block that fits.
    min_steps = 4 if num_cores >= 2 else 1
    TN = _pick_batch_tile(N, per_sample, budget, min_steps)
    block_bytes = TN * per_sample
    grid = (N // TN,)

    vmem_limit = int(min(vmem_ceiling, max(4 * block_bytes + headroom, 32 << 20)))

    CC = _pick_channel_chunk(C)

    # Memory-bound: the only real traffic is one read + one write of x.
    cost = pl.CostEstimate(
        flops=int(N * HW * (3 * C + 5 * K * K + 8)),
        transcendentals=int(N * HW),
        bytes_accessed=int(2 * N * C * HW * itemsize + w_flat.size * 4),
    )

    kernel = functools.partial(_spatial_attention_kernel, K=K, P=P, H=H, W=W, CC=CC)
    # NOTE: input_output_aliases={1: 0} would reuse x's HBM buffer for the output
    # (capacity saving only); left off so callers can keep using x afterwards.
    out = pl.pallas_call(
        kernel,
        out_shape=jax.ShapeDtypeStruct((N, C, HW), x.dtype),
        grid_spec=pltpu.PrefetchScalarGridSpec(
            num_scalar_prefetch=1,                 # conv weights prefetched into SMEM
            grid=grid,
            in_specs=[pl.BlockSpec((TN, C, HW), lambda n, w: (n, 0, 0))],
            out_specs=pl.BlockSpec((TN, C, HW), lambda n, w: (n, 0, 0)),
        ),
        compiler_params=pltpu.CompilerParams(
            dimension_semantics=("parallel",),
            vmem_limit_bytes=vmem_limit,
        ),
        cost_estimate=cost,
    )(w_flat, x_flat)
    return out.reshape(N, C, H, W)


def _reference(x, conv_weight, kernel_size=3):
    """Pure-JAX reference matching the PyTorch module."""
    P = 3 if kernel_size == 7 else 1
    avg = jnp.mean(x, axis=1, keepdims=True)
    mx = jnp.max(x, axis=1, keepdims=True)
    scale = jnp.concatenate([avg, mx], axis=1)               # (N, 2, H, W)
    scale = jax.lax.conv_general_dilated(
        scale, conv_weight, window_strides=(1, 1), padding=[(P, P), (P, P)],
        dimension_numbers=("NCHW", "OIHW", "NCHW"))
    scale = jnp.maximum(scale, 0.0)                          # ConvModule ReLU
    return x * jax.nn.sigmoid(scale)


if __name__ == "__main__":
    key = jax.random.PRNGKey(0)
    k_x, k_w = jax.random.split(key)

    N, C, H, W = 2, 4, 16, 16
    kernel_size = 3
    x = jax.random.normal(k_x, (N, C, H, W), dtype=jnp.float32)
    # Deterministic synthetic conv weight: Conv2d(2, 1, 3, bias=False) -> (1, 2, 3, 3)
    conv_w = jax.random.normal(k_w, (1, 2, kernel_size, kernel_size),
                               dtype=jnp.float32) * 0.1

    out = spatial_attention(x, conv_w, kernel_size=kernel_size)
    out = jax.block_until_ready(out)

    ref = _reference(x, conv_w, kernel_size=kernel_size)
    assert out.shape == x.shape and out.dtype == x.dtype
    assert jnp.allclose(out, ref, atol=1e-5, rtol=1e-5), "mismatch vs JAX reference"
    print("KERNEL_OK")
</pallas_src>

<mosaic_0001>
module attributes {stable_mosaic.version = 11 : i64} {
  func.func @_spatial_attention_kernel(%arg0: i32, %arg1: memref<18xf32, #tpu.memory_space<smem>>, %arg2: memref<2x4x256xf32, #tpu.memory_space<vmem>>, %arg3: memref<2x4x256xf32, #tpu.memory_space<vmem>>) attributes {dimension_semantics = [#tpu.dimension_semantics<parallel>], iteration_bounds = array<i64: 1>, scalar_prefetch = 1 : i64, scratch_operands = 0 : i64, tpu.core_type = #tpu.core_type<tc>, window_params = [{transform_indices = @transform_0, window_bounds = array<i64: 2, 4, 256>}, {transform_indices = @transform_1, window_bounds = array<i64: 2, 4, 256>}]} {
    %cst = arith.constant 0.000000e+00 : f32
    %0 = vector.broadcast %cst : f32 to vector<2x256xf32>
    %cst_0 = arith.constant 0xFF800000 : f32
    %1 = vector.broadcast %cst_0 : f32 to vector<2x256xf32>
    %c0 = arith.constant 0 : index
    %c0_1 = arith.constant 0 : index
    %c0_2 = arith.constant 0 : index
    %2 = vector.load %arg2[%c0, %c0_1, %c0_2] : memref<2x4x256xf32, #tpu.memory_space<vmem>>, vector<2x4x256xf32>
    %cst_3 = arith.constant dense<0.000000e+00> : vector<2x256xf32>
    %3 = vector.multi_reduction <add>, %2, %cst_3 [1] : vector<2x4x256xf32> to vector<2x256xf32>
    %4 = arith.addf %0, %3 : vector<2x256xf32>
    %cst_4 = arith.constant dense<0xFF800000> : vector<2x256xf32>
    %5 = vector.multi_reduction <maximumf>, %2, %cst_4 [1] : vector<2x4x256xf32> to vector<2x256xf32>
    %6 = arith.maximumf %1, %5 : vector<2x256xf32>
    %cst_5 = arith.constant 2.500000e-01 : f32
    %7 = vector.broadcast %cst_5 : f32 to vector<2x256xf32>
    %8 = arith.mulf %4, %7 : vector<2x256xf32>
    %c0_6 = arith.constant 0 : index
    %9 = memref.load %arg1[%c0_6] : memref<18xf32, #tpu.memory_space<smem>>
    %c1 = arith.constant 1 : index
    %10 = memref.load %arg1[%c1] : memref<18xf32, #tpu.memory_space<smem>>
    %c2 = arith.constant 2 : index
    %11 = memref.load %arg1[%c2] : memref<18xf32, #tpu.memory_space<smem>>
    %c3 = arith.constant 3 : index
    %12 = memref.load %arg1[%c3] : memref<18xf32, #tpu.memory_space<smem>>
    %c4 = arith.constant 4 : index
    %13 = memref.load %arg1[%c4] : memref<18xf32, #tpu.memory_space<smem>>
    %c5 = arith.constant 5 : index
    %14 = memref.load %arg1[%c5] : memref<18xf32, #tpu.memory_space<smem>>
    %c6 = arith.constant 6 : index
    %15 = memref.load %arg1[%c6] : memref<18xf32, #tpu.memory_space<smem>>
    %c7 = arith.constant 7 : index
    %16 = memref.load %arg1[%c7] : memref<18xf32, #tpu.memory_space<smem>>
    %c8 = arith.constant 8 : index
    %17 = memref.load %arg1[%c8] : memref<18xf32, #tpu.memory_space<smem>>
    %c9 = arith.constant 9 : index
    %18 = memref.load %arg1[%c9] : memref<18xf32, #tpu.memory_space<smem>>
    %c10 = arith.constant 10 : index
    %19 = memref.load %arg1[%c10] : memref<18xf32, #tpu.memory_space<smem>>
    %c11 = arith.constant 11 : index
    %20 = memref.load %arg1[%c11] : memref<18xf32, #tpu.memory_space<smem>>
    %c12 = arith.constant 12 : index
    %21 = memref.load %arg1[%c12] : memref<18xf32, #tpu.memory_space<smem>>
    %c13 = arith.constant 13 : index
    %22 = memref.load %arg1[%c13] : memref<18xf32, #tpu.memory_space<smem>>
    %c14 = arith.constant 14 : index
    %23 = memref.load %arg1[%c14] : memref<18xf32, #tpu.memory_space<smem>>
    %c15 = arith.constant 15 : index
    %24 = memref.load %arg1[%c15] : memref<18xf32, #tpu.memory_space<smem>>
    %c16 = arith.constant 16 : index
    %25 = memref.load %arg1[%c16] : memref<18xf32, #tpu.memory_space<smem>>
    %c17 = arith.constant 17 : index
    %26 = memref.load %arg1[%c17] : memref<18xf32, #tpu.memory_space<smem>>
    %27 = tpu.iota {dimensions = array<i32: 1>} : vector<1x256xi32>
    %c16_i32 = arith.constant 16 : i32
    %c0_i32 = arith.constant 0 : i32
    %28 = arith.cmpi eq, %c16_i32, %c0_i32 : i32
    %c1_i32 = arith.constant 1 : i32
    %29 = arith.select %28, %c1_i32, %c16_i32 : i32
    %30 = vector.broadcast %29 : i32 to vector<1x256xi32>
    %31 = arith.remsi %27, %30 : vector<1x256xi32>
    %c0_i32_7 = arith.constant 0 : i32
    %32 = vector.broadcast %c0_i32_7 : i32 to vector<1x256xi32>
    %33 = arith.cmpi ne, %31, %32 : vector<1x256xi32>
    %c0_i32_8 = arith.constant 0 : i32
    %34 = vector.broadcast %c0_i32_8 : i32 to vector<1x256xi32>
    %35 = arith.cmpi slt, %31, %34 : vector<1x256xi32>
    %c0_i32_9 = arith.constant 0 : i32
    %36 = arith.cmpi slt, %29, %c0_i32_9 : i32
    %37 = vector.broadcast %36 : i1 to vector<1x256xi1>
    %38 = vector.broadcast %37 : vector<1x256xi1> to vector<1x256xi1>
    %39 = arith.xori %35, %38 : vector<1x256xi1>
    %40 = arith.andi %39, %33 : vector<1x256xi1>
    %41 = vector.broadcast %29 : i32 to vector<1x256xi32>
    %42 = arith.addi %31, %41 : vector<1x256xi32>
    %43 = arith.select %40, %42, %31 : vector<1x256xi1>, vector<1x256xi32>
    %cst_10 = arith.constant 0.000000e+00 : f32
    %44 = vector.broadcast %cst_10 : f32 to vector<2x256xf32>
    %45 = vector.broadcast %9 : f32 to vector<2x256xf32>
    %46 = arith.mulf %45, %8 : vector<2x256xf32>
    %47 = vector.broadcast %18 : f32 to vector<2x256xf32>
    %48 = arith.mulf %47, %6 : vector<2x256xf32>
    %49 = arith.addf %46, %48 : vector<2x256xf32>
    %c17_i32 = arith.constant 17 : i32
    %50 = tpu.dynamic_rotate %49 by %c17_i32 dim 1 : vector<2x256xf32>, i32 -> vector<2x256xf32>
    %c1_i32_11 = arith.constant 1 : i32
    %51 = vector.broadcast %c1_i32_11 : i32 to vector<1x256xi32>
    %52 = arith.cmpi sge, %43, %51 : vector<1x256xi32>
    %cst_12 = arith.constant 0.000000e+00 : f32
    %53 = vector.shape_cast %52 : vector<1x256xi1> to vector<1x256xi1>
    %54 = vector.broadcast %53 : vector<1x256xi1> to vector<2x256xi1>
    %55 = vector.broadcast %cst_12 : f32 to vector<2x256xf32>
    %56 = arith.select %54, %50, %55 : vector<2x256xi1>, vector<2x256xf32>
    %c16_i32_13 = arith.constant 16 : i32
    %57 = vector.broadcast %c16_i32_13 : i32 to vector<1x256xi32>
    %58 = arith.cmpi sge, %27, %57 : vector<1x256xi32>
    %cst_14 = arith.constant 0.000000e+00 : f32
    %59 = vector.shape_cast %58 : vector<1x256xi1> to vector<1x256xi1>
    %60 = vector.broadcast %59 : vector<1x256xi1> to vector<2x256xi1>
    %61 = vector.broadcast %cst_14 : f32 to vector<2x256xf32>
    %62 = arith.select %60, %56, %61 : vector<2x256xi1>, vector<2x256xf32>
    %63 = arith.addf %44, %62 : vector<2x256xf32>
    %64 = vector.broadcast %10 : f32 to vector<2x256xf32>
    %65 = arith.mulf %64, %8 : vector<2x256xf32>
    %66 = vector.broadcast %19 : f32 to vector<2x256xf32>
    %67 = arith.mulf %66, %6 : vector<2x256xf32>
    %68 = arith.addf %65, %67 : vector<2x256xf32>
    %c16_i32_15 = arith.constant 16 : i32
    %69 = tpu.dynamic_rotate %68 by %c16_i32_15 dim 1 : vector<2x256xf32>, i32 -> vector<2x256xf32>
    %c16_i32_16 = arith.constant 16 : i32
    %70 = vector.broadcast %c16_i32_16 : i32 to vector<1x256xi32>
    %71 = arith.cmpi sge, %27, %70 : vector<1x256xi32>
    %cst_17 = arith.constant 0.000000e+00 : f32
    %72 = vector.shape_cast %71 : vector<1x256xi1> to vector<1x256xi1>
    %73 = vector.broadcast %72 : vector<1x256xi1> to vector<2x256xi1>
    %74 = vector.broadcast %cst_17 : f32 to vector<2x256xf32>
    %75 = arith.select %73, %69, %74 : vector<2x256xi1>, vector<2x256xf32>
    %76 = arith.addf %63, %75 : vector<2x256xf32>
    %77 = vector.broadcast %11 : f32 to vector<2x256xf32>
    %78 = arith.mulf %77, %8 : vector<2x256xf32>
    %79 = vector.broadcast %20 : f32 to vector<2x256xf32>
    %80 = arith.mulf %79, %6 : vector<2x256xf32>
    %81 = arith.addf %78, %80 : vector<2x256xf32>
    %c15_i32 = arith.constant 15 : i32
    %82 = tpu.dynamic_rotate %81 by %c15_i32 dim 1 : vector<2x256xf32>, i32 -> vector<2x256xf32>
    %c15_i32_18 = arith.constant 15 : i32
    %83 = vector.broadcast %c15_i32_18 : i32 to vector<1x256xi32>
    %84 = arith.cmpi slt, %43, %83 : vector<1x256xi32>
    %cst_19 = arith.constant 0.000000e+00 : f32
    %85 = vector.shape_cast %84 : vector<1x256xi1> to vector<1x256xi1>
    %86 = vector.broadcast %85 : vector<1x256xi1> to vector<2x256xi1>
    %87 = vector.broadcast %cst_19 : f32 to vector<2x256xf32>
    %88 = arith.select %86, %82, %87 : vector<2x256xi1>, vector<2x256xf32>
    %c16_i32_20 = arith.constant 16 : i32
    %89 = vector.broadcast %c16_i32_20 : i32 to vector<1x256xi32>
    %90 = arith.cmpi sge, %27, %89 : vector<1x256xi32>
    %cst_21 = arith.constant 0.000000e+00 : f32
    %91 = vector.shape_cast %90 : vector<1x256xi1> to vector<1x256xi1>
    %92 = vector.broadcast %91 : vector<1x256xi1> to vector<2x256xi1>
    %93 = vector.broadcast %cst_21 : f32 to vector<2x256xf32>
    %94 = arith.select %92, %88, %93 : vector<2x256xi1>, vector<2x256xf32>
    %95 = arith.addf %76, %94 : vector<2x256xf32>
    %96 = vector.broadcast %12 : f32 to vector<2x256xf32>
    %97 = arith.mulf %96, %8 : vector<2x256xf32>
    %98 = vector.broadcast %21 : f32 to vector<2x256xf32>
    %99 = arith.mulf %98, %6 : vector<2x256xf32>
    %100 = arith.addf %97, %99 : vector<2x256xf32>
    %c1_i32_22 = arith.constant 1 : i32
    %101 = tpu.dynamic_rotate %100 by %c1_i32_22 dim 1 : vector<2x256xf32>, i32 -> vector<2x256xf32>
    %c1_i32_23 = arith.constant 1 : i32
    %102 = vector.broadcast %c1_i32_23 : i32 to vector<1x256xi32>
    %103 = arith.cmpi sge, %43, %102 : vector<1x256xi32>
    %cst_24 = arith.constant 0.000000e+00 : f32
    %104 = vector.shape_cast %103 : vector<1x256xi1> to vector<1x256xi1>
    %105 = vector.broadcast %104 : vector<1x256xi1> to vector<2x256xi1>
    %106 = vector.broadcast %cst_24 : f32 to vector<2x256xf32>
    %107 = arith.select %105, %101, %106 : vector<2x256xi1>, vector<2x256xf32>
    %108 = arith.addf %95, %107 : vector<2x256xf32>
    %109 = vector.broadcast %13 : f32 to vector<2x256xf32>
    %110 = arith.mulf %109, %8 : vector<2x256xf32>
    %111 = vector.broadcast %22 : f32 to vector<2x256xf32>
    %112 = arith.mulf %111, %6 : vector<2x256xf32>
    %113 = arith.addf %110, %112 : vector<2x256xf32>
    %114 = arith.addf %108, %113 : vector<2x256xf32>
    %115 = vector.broadcast %14 : f32 to vector<2x256xf32>
    %116 = arith.mulf %115, %8 : vector<2x256xf32>
    %117 = vector.broadcast %23 : f32 to vector<2x256xf32>
    %118 = arith.mulf %117, %6 : vector<2x256xf32>
    %119 = arith.addf %116, %118 : vector<2x256xf32>
    %c255_i32 = arith.constant 255 : i32
    %120 = tpu.dynamic_rotate %119 by %c255_i32 dim 1 : vector<2x256xf32>, i32 -> vector<2x256xf32>
    %c15_i32_25 = arith.constant 15 : i32
    %121 = vector.broadcast %c15_i32_25 : i32 to vector<1x256xi32>
    %122 = arith.cmpi slt, %43, %121 : vector<1x256xi32>
    %cst_26 = arith.constant 0.000000e+00 : f32
    %123 = vector.shape_cast %122 : vector<1x256xi1> to vector<1x256xi1>
    %124 = vector.broadcast %123 : vector<1x256xi1> to vector<2x256xi1>
    %125 = vector.broadcast %cst_26 : f32 to vector<2x256xf32>
    %126 = arith.select %124, %120, %125 : vector<2x256xi1>, vector<2x256xf32>
    %127 = arith.addf %114, %126 : vector<2x256xf32>
    %128 = vector.broadcast %15 : f32 to vector<2x256xf32>
    %129 = arith.mulf %128, %8 : vector<2x256xf32>
    %130 = vector.broadcast %24 : f32 to vector<2x256xf32>
    %131 = arith.mulf %130, %6 : vector<2x256xf32>
    %132 = arith.addf %129, %131 : vector<2x256xf32>
    %c241_i32 = arith.constant 241 : i32
    %133 = tpu.dynamic_rotate %132 by %c241_i32 dim 1 : vector<2x256xf32>, i32 -> vector<2x256xf32>
    %c1_i32_27 = arith.constant 1 : i32
    %134 = vector.broadcast %c1_i32_27 : i32 to vector<1x256xi32>
    %135 = arith.cmpi sge, %43, %134 : vector<1x256xi32>
    %cst_28 = arith.constant 0.000000e+00 : f32
    %136 = vector.shape_cast %135 : vector<1x256xi1> to vector<1x256xi1>
    %137 = vector.broadcast %136 : vector<1x256xi1> to vector<2x256xi1>
    %138 = vector.broadcast %cst_28 : f32 to vector<2x256xf32>
    %139 = arith.select %137, %133, %138 : vector<2x256xi1>, vector<2x256xf32>
    %c240_i32 = arith.constant 240 : i32
    %140 = vector.broadcast %c240_i32 : i32 to vector<1x256xi32>
    %141 = arith.cmpi slt, %27, %140 : vector<1x256xi32>
    %cst_29 = arith.constant 0.000000e+00 : f32
    %142 = vector.shape_cast %141 : vector<1x256xi1> to vector<1x256xi1>
    %143 = vector.broadcast %142 : vector<1x256xi1> to vector<2x256xi1>
    %144 = vector.broadcast %cst_29 : f32 to vector<2x256xf32>
    %145 = arith.select %143, %139, %144 : vector<2x256xi1>, vector<2x256xf32>
    %146 = arith.addf %127, %145 : vector<2x256xf32>
    %147 = vector.broadcast %16 : f32 to vector<2x256xf32>
    %148 = arith.mulf %147, %8 : vector<2x256xf32>
    %149 = vector.broadcast %25 : f32 to vector<2x256xf32>
    %150 = arith.mulf %149, %6 : vector<2x256xf32>
    %151 = arith.addf %148, %150 : vector<2x256xf32>
    %c240_i32_30 = arith.constant 240 : i32
    %152 = tpu.dynamic_rotate %151 by %c240_i32_30 dim 1 : vector<2x256xf32>, i32 -> vector<2x256xf32>
    %c240_i32_31 = arith.constant 240 : i32
    %153 = vector.broadcast %c240_i32_31 : i32 to vector<1x256xi32>
    %154 = arith.cmpi slt, %27, %153 : vector<1x256xi32>
    %cst_32 = arith.constant 0.000000e+00 : f32
    %155 = vector.shape_cast %154 : vector<1x256xi1> to vector<1x256xi1>
    %156 = vector.broadcast %155 : vector<1x256xi1> to vector<2x256xi1>
    %157 = vector.broadcast %cst_32 : f32 to vector<2x256xf32>
    %158 = arith.select %156, %152, %157 : vector<2x256xi1>, vector<2x256xf32>
    %159 = arith.addf %146, %158 : vector<2x256xf32>
    %160 = vector.broadcast %17 : f32 to vector<2x256xf32>
    %161 = arith.mulf %160, %8 : vector<2x256xf32>
    %162 = vector.broadcast %26 : f32 to vector<2x256xf32>
    %163 = arith.mulf %162, %6 : vector<2x256xf32>
    %164 = arith.addf %161, %163 : vector<2x256xf32>
    %c239_i32 = arith.constant 239 : i32
    %165 = tpu.dynamic_rotate %164 by %c239_i32 dim 1 : vector<2x256xf32>, i32 -> vector<2x256xf32>
    %c15_i32_33 = arith.constant 15 : i32
    %166 = vector.broadcast %c15_i32_33 : i32 to vector<1x256xi32>
    %167 = arith.cmpi slt, %43, %166 : vector<1x256xi32>
    %cst_34 = arith.constant 0.000000e+00 : f32
    %168 = vector.shape_cast %167 : vector<1x256xi1> to vector<1x256xi1>
    %169 = vector.broadcast %168 : vector<1x256xi1> to vector<2x256xi1>
    %170 = vector.broadcast %cst_34 : f32 to vector<2x256xf32>
    %171 = arith.select %169, %165, %170 : vector<2x256xi1>, vector<2x256xf32>
    %c240_i32_35 = arith.constant 240 : i32
    %172 = vector.broadcast %c240_i32_35 : i32 to vector<1x256xi32>
    %173 = arith.cmpi slt, %27, %172 : vector<1x256xi32>
    %cst_36 = arith.constant 0.000000e+00 : f32
    %174 = vector.shape_cast %173 : vector<1x256xi1> to vector<1x256xi1>
    %175 = vector.broadcast %174 : vector<1x256xi1> to vector<2x256xi1>
    %176 = vector.broadcast %cst_36 : f32 to vector<2x256xf32>
    %177 = arith.select %175, %171, %176 : vector<2x256xi1>, vector<2x256xf32>
    %178 = arith.addf %159, %177 : vector<2x256xf32>
    %cst_37 = arith.constant 0.000000e+00 : f32
    %179 = vector.broadcast %cst_37 : f32 to vector<2x256xf32>
    %180 = arith.maximumf %178, %179 : vector<2x256xf32>
    %181 = arith.negf %180 : vector<2x256xf32>
    %182 = math.exp %181 : vector<2x256xf32>
    %cst_38 = arith.constant 1.000000e+00 : f32
    %183 = vector.broadcast %cst_38 : f32 to vector<2x256xf32>
    %184 = arith.addf %183, %182 : vector<2x256xf32>
    %185 = arith.divf %183, %184 : vector<2x256xf32>
    %c0_39 = arith.constant 0 : index
    %c0_40 = arith.constant 0 : index
    %c0_41 = arith.constant 0 : index
    %186 = vector.load %arg2[%c0_39, %c0_40, %c0_41] : memref<2x4x256xf32, #tpu.memory_space<vmem>>, vector<2x4x256xf32>
    %187 = vector.shape_cast %185 : vector<2x256xf32> to vector<2x1x256xf32>
    %188 = vector.broadcast %187 : vector<2x1x256xf32> to vector<2x4x256xf32>
    %189 = arith.mulf %186, %188 : vector<2x4x256xf32>
    %c0_42 = arith.constant 0 : index
    %c0_43 = arith.constant 0 : index
    %c0_44 = arith.constant 0 : index
    %190 = vector.load %arg3[%c0_42, %c0_43, %c0_44] : memref<2x4x256xf32, #tpu.memory_space<vmem>>, vector<2x4x256xf32>
    tpu.vector_store %arg3[%c0_42, %c0_43, %c0_44], %189 {strides = array<i32>} : memref<2x4x256xf32, #tpu.memory_space<vmem>>, vector<2x4x256xf32>,
    return
  }
  func.func @transform_0(%arg0: i32, %arg1: memref<18xf32, #tpu.memory_space<smem>>) -> (i32, i32, i32) {
    %c0_i32 = arith.constant 0 : i32
    %c0_i32_0 = arith.constant 0 : i32
    %c0_i32_1 = arith.constant 0 : i32
    return %arg0, %c0_i32, %c0_i32_0 : i32, i32, i32
  }
  func.func @transform_1(%arg0: i32, %arg1: memref<18xf32, #tpu.memory_space<smem>>) -> (i32, i32, i32) {
    %c0_i32 = arith.constant 0 : i32
    %c0_i32_0 = arith.constant 0 : i32
    %c0_i32_1 = arith.constant 0 : i32
    return %arg0, %c0_i32, %c0_i32_0 : i32, i32, i32
  }
}

</mosaic_0001>

<bundles_post_ra>
// kernel: tpu_custom_call.1
= control target key start
LH: loop header
LB: loop body
LE: loop exit
PB: predicated region body
PF: predicated region fallthrough
CT: control target
= control target key end

     0   :  { %s1014_s0 = inlined_call_operand.hbm [shape: f32[18], index: 0, kind: input, shape index: {}]   ;;  %s1015_s1 = inlined_call_operand.hbm [shape: f32[2,4,256], index: 1, kind: input, shape index: {}]   ;;  %s1016_s2 = inlined_call_operand.hbm [shape: f32[2,4,256], index: 2, kind: output, shape index: {}]  }
   0x1   :  { %s590_s11 = scalar_lea.hbm %s1014_s0, 16 }
   0x2   :  { %p591_p0 = scmp.ne.s32.totalorder %s1014_s0, %s590_s11  ;;  %p594_p1 = scmp.lt.u32.totalorder %s590_s11, %s1014_s0 }
   0x4   :  { %p596_p2 = pnand %p594_p1, %p591_p0 }
   0x6   :  { %599 = shalt.err (!%p596_p2)  }
   0x7   :  { %s650_s16 = smov [#allocation3]  }
   0x8   :  { %8 = dma.hbm_to_smem %s1014_s0, 16, %s650_s16, [#allocation2] }
   0x9   :  { %644 = dma.done.wait [#allocation2], 16 }
   0xa   :  { %645 = vsyncadd [#allocation2], 4294967280 }
   0xb   :  { %10 = sfence }
   0xc   :  { %11 = vsyncpa [#allocation5], 0 }
   0xd   :  { %12 = vsyncpa [#allocation6], 0  ;;  %s651_s19 = smov [#allocation4]   ;;  %s600_s23 = scalar_lea.hbm %s1015_s1, 256 }
   0xe   :  { %s18_s20 = sshll.u32 %s651_s19, 4  ;;  %p601_p3 = scmp.ne.s32.totalorder %s1015_s1, %s600_s23  ;;  %s19_s20 = int_to_ptr.vmem [resolvable:$true] %s18_s20 }
   0xf   :  { %p604_p4 = scmp.lt.u32.totalorder %s600_s23, %s1015_s1 }
  0x11   :  { %p606_p5 = pnand %p604_p4, %p601_p3 }
  0x13   :  { %609 = shalt.err (!%p606_p5)
}
  0x14   :  { %s610_s0 = scalar_lea.vmem %s19_s20, 256  ;;  %p615_p7 = scmp.lt.s32.totalorder %s19_s20, %s19_s20 }
  0x15   :  { %p611_p6 = scmp.ne.s32.totalorder %s19_s20, %s610_s0  ;;  %p616_p8 = scmp.lt.s32.totalorder %s610_s0, %s610_s0 }
  0x17   :  { %p617_p9 = por %p616_p8, %p615_p7 }
  0x19   :  { %p618_p10 = pnand %p617_p9, %p611_p6 }
  0x1b   :  { %621 = shalt.err (!%p618_p10)
}
  0x1c   :  { %s652_s28 = smov 128   ;;  %s653_s29 = smov 8  }
  0x1d   :  { %24 = dma.hbm_to_vmem [thread:$0]  %s1015_s1, 256, %s19_s20, [#allocation5], %s652_s28, %s652_s28, %s653_s29  }
  0x1e   :  { %646 = dma.done.wait [#allocation5], 256  }
  0x1f   :  { %647 = vsyncadd [#allocation5], 4294967040  ;;  %s547_s4 = sld [smem:[#allocation3 + $0x1]]  ;;  %s556_s5 = sld [smem:[#allocation3 + $0xa]]  ;;  %vm36_vm0 = vcmask 1043456   ;;  %v706_v0 = vld [vmem:[#allocation4] sm:$0xff] }
  0x20   :  { %s101_s6 = sld [smem:[#allocation3]]  ;;  %s555_s7 = sld [smem:[#allocation3 + $0x9]]  ;;  %v708_v1 = vld [vmem:[#allocation4 + $0x8] sm:$0xff]  ;;  %v37_v4 = vsel %vm36_vm0, %v706_v0, 0.0  ;;  %v69_v6 = vsel %vm36_vm0, %v706_v0, -inf  ;;  %v32_v20 = vcombine.high %v706_v0, %v706_v0  ;;  %vm164_vm1 = vcmask 1041409  }
  0x21   :  { %s548_s8 = sld [smem:[#allocation3 + $0x2]]  ;;  %s557_s9 = sld [smem:[#allocation3 + $0xb]]  ;;  %v51_v5 = vsel %vm36_vm0, %v708_v1, 0.0  ;;  %v83_v7 = vsel %vm36_vm0, %v708_v1, -inf  ;;  %v38_v8 = vrot.slane %v37_v4, 4  ;;  %v70_v10 = vrot.slane %v69_v6, 4 }
  0x22   :  { %s549_s10 = sld [smem:[#allocation3 + $0x3]]  ;;  %s558_s11 = sld [smem:[#allocation3 + $0xc]]  ;;  %v52_v9 = vrot.slane %v51_v5, 4  ;;  %v84_v11 = vrot.slane %v83_v7, 4  ;;  %v33_v21 = vcombine.high %v708_v1, %v708_v1  ;;  %v44_v28 = vsel %vm36_vm0, %v32_v20, 0.0 }
  0x23   :  { %v39_v16 = vadd.f32 %v38_v8, %v37_v4  ;;  %v71_v18 = vmax.f32 %v69_v6, %v70_v10  ;;  %v76_v30 = vsel %vm36_vm0, %v32_v20, -inf  ;;  %v45_v36 = vrot.slane %v44_v28, 4  ;;  %s746_s1 = sld [smem:[#allocation3 + $0x5]]  ;;  %s772_s12 = sld [smem:[#allocation3 + $0xe]] }
  0x24   :  { %v53_v17 = vadd.f32 %v52_v9, %v51_v5  ;;  %v85_v19 = vmax.f32 %v83_v7, %v84_v11  ;;  %v58_v29 = vsel %vm36_vm0, %v33_v21, 0.0  ;;  %v90_v31 = vsel %vm36_vm0, %v33_v21, -inf  ;;  %s654_s13 = smov 16   ;;  %s655_s14 = smov 17  }
  0x25   :  { %v710_v2 = vstv %s547_s4  ;;  %v712_v3 = vstv %s556_s5  ;;  %v40_v24 = vrot.slane %v39_v16, 2  ;;  %v72_v26 = vrot.slane %v71_v18, 2  ;;  %s656_s15 = smov 15   ;;  %s815_s16 = sld [smem:[#allocation3 + $0x6]] }
  0x26   :  { %v722_v12 = vstv %s101_s6  ;;  %v724_v13 = vstv %s555_s7  ;;  %v54_v25 = vrot.slane %v53_v17, 2  ;;  %v86_v27 = vrot.slane %v85_v19, 2  ;;  %s828_s17 = sld [smem:[#allocation3 + $0xf]]  ;;  %s657_s18 = smov 1  }
  0x27   :  { %v726_v14 = vstv %s548_s8  ;;  %v728_v15 = vstv %s557_s9  ;;  %v41_v32 = vadd.f32 %v40_v24, %v39_v16  ;;  %v73_v34 = vmax.f32 %v71_v18, %v72_v26  ;;  %s840_s19 = sld [smem:[#allocation3 + $0x7]]  ;;  %s842_s20 = sld [smem:[#allocation3 + $0x10]] }
  0x28   :  { %v734_v22 = vstv %s549_s10  ;;  %v736_v23 = vstv %s558_s11  ;;  %v55_v33 = vadd.f32 %v54_v25, %v53_v17  ;;  %v87_v35 = vmax.f32 %v85_v19, %v86_v27  ;;  %s861_s21 = sld [smem:[#allocation3 + $0x8]]  ;;  %s863_s22 = sld [smem:[#allocation3 + $0x11]] }
  0x29   :  { %v59_v37 = vrot.slane %v58_v29, 4  ;;  %v77_v38 = vrot.slane %v76_v30, 4  ;;  %v91_v39 = vrot.slane %v90_v31, 4  ;;  %v42_v40 = vrot.slane %v41_v32, 1  ;;  %s879_s23 = sld [smem:[#allocation3 + $0x4]]  ;;  %s658_s24 = smov 127  }
  0x2a   :  { %v56_v41 = vrot.slane %v55_v33, 1  ;;  %v74_v42 = vrot.slane %v73_v34, 1  ;;  %v88_v43 = vrot.slane %v87_v35, 1  ;;  %v46_v44 = vadd.f32 %v45_v36, %v44_v28  ;;  %s887_s25 = sld [smem:[#allocation3 + $0xd]]  ;;  %s659_s26 = smov 113  }
  0x2b   :  { %v60_v45 = vadd.f32 %v59_v37, %v58_v29  ;;  %v78_v46 = vmax.f32 %v76_v30, %v77_v38  ;;  %v92_v47 = vmax.f32 %v90_v31, %v91_v39  ;;  %v43_v48 = vadd.f32 %v42_v40, %v41_v32  ;;  %s660_s27 = smov 112   ;;  %s661_s0 = smov 111  }
  0x2c   :  { %v57_v49 = vadd.f32 %v56_v41, %v55_v33  ;;  %v742_v50 = vmax.f32 %v73_v34, %v74_v42  ;;  %v744_v51 = vmax.f32 %v87_v35, %v88_v43  ;;  %v47_v52 = vrot.slane %v46_v44, 2  ;;  %s663_s30 = smov [#allocation7]  }
  0x2d   :  { %v61_v53 = vrot.slane %v60_v45, 2  ;;  %v79_v54 = vrot.slane %v78_v46, 2  ;;  %v93_v55 = vrot.slane %v92_v47, 2  ;;  %v748_v56 = vmul.f32 0.25, %v43_v48  ;;  %s535_s3 = sshll.u32 %s663_s30, 4  ;;  %s536_s3 = int_to_ptr.vmem [resolvable:$true] %s535_s3 }
  0x2e   :  { %v750_v57 = vmul.f32 0.25, %v57_v49  ;;  %v200_v58 = vmul.f32 %v712_v3, %v742_v50  ;;  %v202_v59 = vmul.f32 %v712_v3, %v744_v51  ;;  %v152_v60 = vmul.f32 %v724_v13, %v742_v50  ;;  %s622_s4 = scalar_lea.vmem %s536_s3, 256  ;;  %p627_p12 = scmp.lt.s32.totalorder %s536_s3, %s536_s3 }
  0x2f   :  { %v154_v61 = vmul.f32 %v724_v13, %v744_v51  ;;  %v233_v62 = vmul.f32 %v728_v15, %v742_v50  ;;  %v235_v63 = vmul.f32 %v728_v15, %v744_v51  ;;  %v195_v4 = vmul.f32 %v710_v2, %v748_v56  ;;  %p623_p11 = scmp.ne.s32.totalorder %s536_s3, %s622_s4  ;;  %p628_p13 = scmp.lt.s32.totalorder %s622_s4, %s622_s4 }
  0x30   :  { %v197_v5 = vmul.f32 %v710_v2, %v750_v57  ;;  %v147_v6 = vmul.f32 %v722_v12, %v748_v56  ;;  %v149_v7 = vmul.f32 %v722_v12, %v750_v57  ;;  %v228_v8 = vmul.f32 %v726_v14, %v748_v56 }
  0x31   :  { %v230_v9 = vmul.f32 %v726_v14, %v750_v57  ;;  %v48_v10 = vadd.f32 %v47_v52, %v46_v44  ;;  %v62_v11 = vadd.f32 %v61_v53, %v60_v45  ;;  %v204_v16 = vadd.f32 %v200_v58, %v195_v4  ;;  %p629_p0 = por %p628_p13, %p627_p12 }
  0x32   :  { %v206_v17 = vadd.f32 %v202_v59, %v197_v5  ;;  %v156_v18 = vadd.f32 %v152_v60, %v147_v6  ;;  %v158_v19 = vadd.f32 %v154_v61, %v149_v7  ;;  %v237_v20 = vadd.f32 %v233_v62, %v228_v8 }
  0x33   :  { %v239_v21 = vadd.f32 %v235_v63, %v230_v9  ;;  %v49_v24 = vrot.slane %v48_v10, 1  ;;  %v63_v25 = vrot.slane %v62_v11, 1  ;;  %v80_v28 = vmax.f32 %v78_v46, %v79_v54  ;;  %p630_p1 = pnand %p629_p0, %p623_p11 }
  0x34   :  { %v212_v26 = vsel %vm164_vm1, %v206_v17, %v204_v16  ;;  %v165_v27 = vsel %vm164_vm1, %v158_v19, %v156_v18  ;;  %v94_v29 = vmax.f32 %v92_v47, %v93_v55  ;;  %v325_v33 = vstv %s746_s1 }
  0x35   :  { %216 = vrot.lane.b32.xlu1 %v212_v26, %s654_s13  ;;  %169 = vrot.lane.b32.xlu0 %v165_v27, %s655_s14  ;;  %v245_v30 = vsel %vm164_vm1, %v239_v21, %v237_v20  ;;  %v50_v31 = vadd.f32 %v49_v24, %v48_v10  ;;  %v64_v32 = vadd.f32 %v63_v25, %v62_v11  ;;  %v81_v34 = vrot.slane %v80_v28, 1 }
  0x36   :  { %v95_v35 = vrot.slane %v94_v29, 1  ;;  %v269_v36 = vmul.f32 %v734_v22, %v748_v56  ;;  %v271_v37 = vmul.f32 %v734_v22, %v750_v57  ;;  %v274_v40 = vmul.f32 %v736_v23, %v742_v50 }
  0x37   :  { %v788_v38 = vmul.f32 0.25, %v50_v31  ;;  %v790_v39 = vmul.f32 0.25, %v64_v32  ;;  %v276_v41 = vmul.f32 %v736_v23, %v744_v51  ;;  %v796_v42 = vmax.f32 %v80_v28, %v81_v34 }
  0x38   :  { %v798_v43 = vmax.f32 %v94_v29, %v95_v35  ;;  %v330_v44 = vstv %s772_s12  ;;  %v326_v45 = vmul.f32 %v325_v33, %v748_v56  ;;  %v278_v48 = vadd.f32 %v274_v40, %v269_v36 }
  0x39   :  { %249 = vrot.lane.b32.xlu0 %v245_v30, %s656_s15  ;;  %v196_v46 = vmul.f32 %v710_v2, %v788_v38  ;;  %v198_v47 = vmul.f32 %v710_v2, %v790_v39  ;;  %v280_v49 = vadd.f32 %v276_v41, %v271_v37  ;;  %v201_v52 = vmul.f32 %v712_v3, %v796_v42 }
  0x3a   :  { %v203_v53 = vmul.f32 %v712_v3, %v798_v43  ;;  %v229_v54 = vmul.f32 %v726_v14, %v788_v38  ;;  %v231_v55 = vmul.f32 %v726_v14, %v790_v39  ;;  %v234_v2 = vmul.f32 %v728_v15, %v796_v42 }
  0x3b   :  { %v286_v58 = vsel %vm164_vm1, %v280_v49, %v278_v48  ;;  %v236_v59 = vmul.f32 %v728_v15, %v798_v43  ;;  %v270_v60 = vmul.f32 %v734_v22, %v788_v38  ;;  %v205_v3 = vadd.f32 %v201_v52, %v196_v46 }
  0x3c   :  { %v207_v61 = vadd.f32 %v203_v53, %v198_v47  ;;  %v272_v62 = vmul.f32 %v734_v22, %v790_v39  ;;  %v275_v14 = vmul.f32 %v736_v23, %v796_v42  ;;  %v238_v63 = vadd.f32 %v234_v2, %v229_v54 }
  0x3d   :  { %290 = vrot.lane.b32.xlu0 %v286_v58, %s657_s18  ;;  %v240_v4 = vadd.f32 %v236_v59, %v231_v55  ;;  %v277_v15 = vmul.f32 %v736_v23, %v798_v43  ;;  %v148_v5 = vmul.f32 %v722_v12, %v788_v38  ;;  %v150_v22 = vmul.f32 %v722_v12, %v790_v39 }
  0x3e   :  { %v213_v6 = vsel %vm164_vm1, %v207_v61, %v205_v3  ;;  %v279_v7 = vadd.f32 %v275_v14, %v270_v60  ;;  %v153_v8 = vmul.f32 %v724_v13, %v796_v42  ;;  %v155_v10 = vmul.f32 %v724_v13, %v798_v43 }
  0x3f   :  { %218 = vrot.lane.b32.xlu1 %v213_v6, %s654_s13  ;;  %v246_v23 = vsel %vm164_vm1, %v240_v4, %v238_v63  ;;  %v281_v9 = vadd.f32 %v277_v15, %v272_v62  ;;  %v327_v11 = vmul.f32 %v325_v33, %v788_v38  ;;  %v329_v12 = vmul.f32 %v325_v33, %v790_v39 }
  0x40   :  { %v157_v16 = vadd.f32 %v153_v8, %v148_v5  ;;  %v332_v17 = vmul.f32 %v330_v44, %v796_v42  ;;  %v334_v18 = vmul.f32 %v330_v44, %v798_v43  ;;  %v159_v20 = vadd.f32 %v155_v10, %v150_v22 }
  0x41   :  { %v287_v19 = vsel %vm164_vm1, %v281_v9, %v279_v7  ;;  %v328_v21 = vmul.f32 %v325_v33, %v750_v57  ;;  %v331_v24 = vmul.f32 %v330_v44, %v742_v50  ;;  %v333_v13 = vmul.f32 %v330_v44, %v744_v51 }
  0x42   :  { %v336_v25 = vadd.f32 %v332_v17, %v327_v11  ;;  %v338_v26 = vadd.f32 %v334_v18, %v329_v12  ;;  %v358_v27 = vstv %s815_s16  ;;  %v166_v28 = vsel %vm164_vm1, %v159_v20, %v157_v16 }
  0x43   :  { %251 = vrot.lane.b32.xlu1 %v246_v23, %s656_s15  ;;  %v335_v29 = vadd.f32 %v331_v24, %v326_v45  ;;  %v360_v30 = vmul.f32 %v358_v27, %v788_v38  ;;  %v362_v31 = vmul.f32 %v358_v27, %v790_v39  ;;  %171 = vrot.lane.b32.xlu0 %v166_v28, %s655_s14  ;;  %v363_v34 = vstv %s828_s17 }
  0x44   :  { %v344_v32 = vsel %vm164_vm1, %v338_v26, %v336_v25  ;;  %v337_v33 = vadd.f32 %v333_v13, %v328_v21  ;;  %v359_v35 = vmul.f32 %v358_v27, %v748_v56  ;;  %v365_v36 = vmul.f32 %v363_v34, %v796_v42 }
  0x45   :  { %v367_v37 = vmul.f32 %v363_v34, %v798_v43  ;;  %v361_v40 = vmul.f32 %v358_v27, %v750_v57  ;;  %v364_v41 = vmul.f32 %v363_v34, %v742_v50  ;;  %v366_v45 = vmul.f32 %v363_v34, %v744_v51 }
  0x46   :  { %v343_v44 = vsel %vm164_vm1, %v337_v33, %v335_v29  ;;  %v399_v46 = vstv %s840_s19  ;;  %v404_v47 = vstv %s842_s20  ;;  %v369_v48 = vadd.f32 %v365_v36, %v360_v30 }
  0x47   :  { %292 = vrot.lane.b32.xlu1 %v287_v19, %s657_s18  ;;  %v371_v49 = vadd.f32 %v367_v37, %v362_v31  ;;  %v368_v52 = vadd.f32 %v364_v41, %v359_v35  ;;  %v401_v53 = vmul.f32 %v399_v46, %v788_v38  ;;  %347 = vrot.lane.b32.xlu0 %v343_v44, %s658_s24  ;;  %v432_v15 = vstv %s861_s21 }
  0x48   :  { %v370_v54 = vadd.f32 %v366_v45, %v361_v40  ;;  %v403_v55 = vmul.f32 %v399_v46, %v790_v39  ;;  %v406_v58 = vmul.f32 %v404_v47, %v796_v42  ;;  %v408_v2 = vmul.f32 %v404_v47, %v798_v43 }
  0x49   :  { %v400_v59 = vmul.f32 %v399_v46, %v748_v56  ;;  %v402_v60 = vmul.f32 %v399_v46, %v750_v57  ;;  %v405_v3 = vmul.f32 %v404_v47, %v742_v50  ;;  %v377_v61 = vsel %vm164_vm1, %v371_v49, %v369_v48 }
  0x4a   :  { %v376_v62 = vsel %vm164_vm1, %v370_v54, %v368_v52  ;;  %v407_v14 = vmul.f32 %v404_v47, %v744_v51  ;;  %v410_v63 = vadd.f32 %v406_v58, %v401_v53  ;;  %v437_v5 = vstv %s863_s22 }
  0x4b   :  { %349 = vrot.lane.b32.xlu1 %v344_v32, %s658_s24  ;;  %v409_v4 = vadd.f32 %v405_v3, %v400_v59  ;;  %380 = vrot.lane.b32.xlu0 %v376_v62, %s659_s26  ;;  %v412_v6 = vadd.f32 %v408_v2, %v403_v55  ;;  %v434_v22 = vmul.f32 %v432_v15, %v788_v38  ;;  %v301_v20 = vstv %s879_s23 }
  0x4c   :  { %v411_v7 = vadd.f32 %v407_v14, %v402_v60  ;;  %v436_v8 = vmul.f32 %v432_v15, %v790_v39  ;;  %v439_v23 = vmul.f32 %v437_v5, %v796_v42  ;;  %v441_v9 = vmul.f32 %v437_v5, %v798_v43 }
  0x4d   :  { %v433_v10 = vmul.f32 %v432_v15, %v748_v56  ;;  %v435_v11 = vmul.f32 %v432_v15, %v750_v57  ;;  %v438_v12 = vmul.f32 %v437_v5, %v742_v50  ;;  %v440_v17 = vmul.f32 %v437_v5, %v744_v51 }
  0x4e   :  { %v417_v16 = vsel %vm164_vm1, %v411_v7, %v409_v4  ;;  %v443_v18 = vadd.f32 %v439_v23, %v434_v22  ;;  %v445_v19 = vadd.f32 %v441_v9, %v436_v8  ;;  %v418_v21 = vsel %vm164_vm1, %v412_v6, %v410_v63 }
  0x4f   :  { %382 = vrot.lane.b32.xlu1 %v377_v61, %s659_s26  ;;  %421 = vrot.lane.b32.xlu0 %v417_v16, %s660_s27  ;;  %v442_v24 = vadd.f32 %v438_v12, %v433_v10  ;;  %v444_v25 = vadd.f32 %v440_v17, %v435_v11  ;;  %v306_v26 = vstv %s887_s25  ;;  %v302_v27 = vmul.f32 %v301_v20, %v748_v56 }
  0x50   :  { %v451_v28 = vsel %vm164_vm1, %v445_v19, %v443_v18  ;;  %v303_v29 = vmul.f32 %v301_v20, %v788_v38  ;;  %v304_v30 = vmul.f32 %v301_v20, %v750_v57  ;;  %v305_v31 = vmul.f32 %v301_v20, %v790_v39 }
  0x51   :  { %v450_v13 = vsel %vm164_vm1, %v444_v25, %v442_v24  ;;  %v307_v32 = vmul.f32 %v306_v26, %v742_v50  ;;  %v308_v33 = vmul.f32 %v306_v26, %v796_v42  ;;  %v309_v34 = vmul.f32 %v306_v26, %v744_v51 }
  0x52   :  { %v310_v35 = vmul.f32 %v306_v26, %v798_v43  ;;  %v119_v44 = vlaneseq  ;;  %v662_v48 = vmov 1966171168  }
  0x53   :  { %423 = vrot.lane.b32.xlu1 %v418_v21, %s660_s27  ;;  %454 = vrot.lane.b32.xlu0 %v450_v13, %s661_s0  ;;  %v311_v56 = vadd.f32 %v307_v32, %v302_v27  ;;  %v312_v36 = vadd.f32 %v308_v33, %v303_v29  ;;  %v313_v37 = vadd.f32 %v309_v34, %v304_v30  ;;  %v485_v2 = vunpack.c.l.s4 %v662_v48 }
  0x54   :  { %v314_v40 = vadd.f32 %v310_v35, %v305_v31  ;;  %v919_v50 = vand.u32 127, %v119_v44 }
  0x55   :  { %v319_v38 = vsel %vm164_vm1, %v313_v37, %v311_v56 }
  0x56   :  { %v320_v41 = vsel %vm164_vm1, %v314_v40, %v312_v36  ;;  %v922_v51 = vadd.s32 128, %v919_v50  ;;  %v126_v46 = vand.u32 15, %v919_v50  ;;  %vm220_vm2 = vcmp.lt.s32.totalorder %v919_v50, 16 }
  0x57   :  { %456 = vrot.lane.b32.xlu1 %v451_v28, %s661_s0  ;;  %vm253_vm3 = vcmp.lt.s32.totalorder %v919_v50, 15  ;;  %vm173_vm4 = vcmp.lt.s32.totalorder %v919_v50, 17  ;;  %vm184_vm8 = vcmp.ge.s32.totalorder %v919_v50, 16  ;;  %vm294_vm9 = vcmp.lt.s32.totalorder %v919_v50, 1 }
  0x58   :  { %v133_v47 = vand.u32 15, %v922_v51  ;;  %vm929_vm5 = vcmp.lt.s32.totalorder %v126_v46, 15  ;;  %vm933_vm6 = vcmp.ge.s32.totalorder %v126_v46, 1  ;;  %vm351_vm11 = vcmp.lt.s32.totalorder %v919_v50, 127 }
  0x59   :  { %vm384_vm12 = vcmp.lt.s32.totalorder %v919_v50, 113  ;;  %vm390_vm13 = vcmp.lt.s32.totalorder %v922_v51, 240  ;;  %vm425_vm14 = vcmp.lt.s32.totalorder %v919_v50, 112  ;;  %vm458_vm15 = vcmp.lt.s32.totalorder %v919_v50, 111 }
  0x5a   :  { %vm937_vm7 = vcmp.ge.s32.totalorder %v133_v47, 1  ;;  %vm945_vm10 = vcmp.lt.s32.totalorder %v133_v47, 15  ;;  %v488_v51 = vshrl.u32 %v119_v44, 7 }
  0xa7   :  { %v170_v57 = vpop.permute.xlu0 %169  ;;  %v217_v39 = vpop.permute.xlu1 %216 }
  0xab   :  { %v250_v45 = vpop.permute.xlu0 %249 }
  0xaf   :  { %v291_v42 = vpop.permute.xlu0 %290 }
  0xb1   :  { %v219_v43 = vpop.permute.xlu1 %218 }
  0xb2   :  { %v222_v54 = vsel %vm220_vm2, %v219_v43, %v217_v39  ;;  %v221_v61 = vsel %vm220_vm2, %v217_v39, %v219_v43 }
  0xb3   :  { %v223_v4 = vsel %vm184_vm8, %v222_v54, 0.0 }
  0xb5   :  { %v252_v49 = vpop.permute.xlu1 %251  ;;  %v172_v58 = vpop.permute.xlu0 %171 }
  0xb6   :  { %v255_v55 = vsel %vm253_vm3, %v252_v49, %v250_v45  ;;  %v254_v59 = vsel %vm253_vm3, %v250_v45, %v252_v49  ;;  %v174_v60 = vsel %vm173_vm4, %v170_v57, %v172_v58  ;;  %v175_v3 = vsel %vm173_vm4, %v172_v58, %v170_v57 }
  0xb7   :  { %v262_v62 = vsel %vm929_vm5, %v255_v55, 0.0  ;;  %v182_v14 = vsel %vm933_vm6, %v175_v3, 0.0  ;;  %v183_v63 = vsel %vm937_vm7, %v174_v60, 0.0  ;;  %v263_v7 = vsel %vm945_vm10, %v254_v59, 0.0 }
  0xb8   :  { %v190_v5 = vsel %vm184_vm8, %v182_v14, 0.0  ;;  %v226_v6 = vadd.f32 %v221_v61, %v183_v63  ;;  %v264_v10 = vsel %vm184_vm8, %v262_v62, 0.0 }
  0xb9   :  { %v293_v15 = vpop.permute.xlu1 %292  ;;  %v225_v23 = vadd.f32 %v223_v4, %v190_v5  ;;  %v348_v9 = vpop.permute.xlu0 %347  ;;  %v486_v4 = vunpack.c.0.s8 %v485_v2 }
  0xba   :  { %v295_v22 = vsel %vm294_vm9, %v291_v42, %v293_v15  ;;  %v296_v8 = vsel %vm294_vm9, %v293_v15, %v291_v42  ;;  %v267_v11 = vadd.f32 %v263_v7, %v226_v6 }
  0xbb   :  { %v298_v16 = vsel %vm937_vm7, %v295_v22, 0.0  ;;  %v266_v12 = vadd.f32 %v264_v10, %v225_v23  ;;  %v297_v17 = vsel %vm933_vm6, %v296_v8, 0.0  ;;  %v489_v5 = vsub.s32 %v486_v4, %v488_v51 }
  0xbc   :  { %v300_v19 = vadd.f32 %v298_v16, %v267_v11  ;;  %v508_v8 = vsub.s32 0, %v488_v51  ;;  %v512_v23 = vsub.s32 1, %v488_v51 }
  0xbd   :  { %v350_v18 = vpop.permute.xlu1 %349  ;;  %v299_v20 = vadd.f32 %v297_v17, %v266_v12  ;;  %v381_v24 = vpop.permute.xlu0 %380 }
  0xbe   :  { %v352_v21 = vsel %vm351_vm11, %v348_v9, %v350_v18  ;;  %v324_v25 = vadd.f32 %v320_v41, %v300_v19  ;;  %v353_v26 = vsel %vm351_vm11, %v350_v18, %v348_v9 }
  0xbf   :  { %v323_v13 = vadd.f32 %v319_v38, %v299_v20  ;;  %v354_v27 = vsel %vm929_vm5, %v352_v21, 0.0  ;;  %v355_v29 = vsel %vm945_vm10, %v353_v26, 0.0 }
  0xc0   :  { %v357_v34 = vadd.f32 %v355_v29, %v324_v25 }
  0xc1   :  { %v383_v28 = vpop.permute.xlu1 %382  ;;  %v356_v30 = vadd.f32 %v354_v27, %v323_v13  ;;  %v422_v33 = vpop.permute.xlu0 %421 }
  0xc2   :  { %v385_v31 = vsel %vm384_vm12, %v381_v24, %v383_v28  ;;  %v386_v32 = vsel %vm384_vm12, %v383_v28, %v381_v24 }
  0xc3   :  { %v387_v35 = vsel %vm933_vm6, %v385_v31, 0.0  ;;  %v388_v56 = vsel %vm937_vm7, %v386_v32, 0.0 }
  0xc4   :  { %v396_v36 = vsel %vm390_vm13, %v388_v56, 0.0  ;;  %v397_v37 = vadd.f32 %v387_v35, %v356_v30 }
  0xc5   :  { %v424_v40 = vpop.permute.xlu1 %423  ;;  %v398_v41 = vadd.f32 %v396_v36, %v357_v34  ;;  %v455_v39 = vpop.permute.xlu0 %454 }
  0xc6   :  { %v427_v38 = vsel %vm425_vm14, %v424_v40, %v422_v33  ;;  %v426_v57 = vsel %vm425_vm14, %v422_v33, %v424_v40 }
  0xc7   :  { %v429_v45 = vsel %vm390_vm13, %v427_v38, 0.0  ;;  %v430_v42 = vadd.f32 %v426_v57, %v397_v37 }
  0xc8   :  { %v431_v49 = vadd.f32 %v429_v45, %v398_v41 }
  0xc9   :  { %v457_v43 = vpop.permute.xlu1 %456 }
  0xca   :  { %v459_v46 = vsel %vm458_vm15, %v455_v39, %v457_v43  ;;  %v460_v47 = vsel %vm458_vm15, %v457_v43, %v455_v39 }
  0xcb   :  { %v461_v52 = vsel %vm929_vm5, %v459_v46, 0.0  ;;  %v462_v53 = vsel %vm945_vm10, %v460_v47, 0.0 }
  0xcc   :  { %v464_v54 = vsel %vm390_vm13, %v462_v53, 0.0  ;;  %v465_v55 = vadd.f32 %v461_v52, %v430_v42 }
  0xcd   :  { %v466_v50 = vadd.f32 %v464_v54, %v431_v49 }
  0xce   :  { %v467_v58 = vmax.f32 %v465_v55, 0.0 }
  0xcf   :  { %v468_v59 = vmax.f32 %v466_v50, 0.0 }
  0xd0   :  { %v564_v60 = vmul.f32 -1.442695, %v467_v58 }
  0xd1   :  { %v565_v3 = vmul.f32 -1.442695, %v468_v59 }
  0xd2   :  { %582 = vpow2.f32 %v564_v60 }
  0xd3   :  { %584 = vpow2.f32 %v565_v3 }
  0xdc   :  { %v583_v61 = vpop.eup %582 }
  0xdd   :  { %v585_v62 = vpop.eup %584  ;;  %v475_v14 = vadd.f32 1.0, %v583_v61 }
  0xde   :  { %v476_v63 = vadd.f32 1.0, %v585_v62 }
  0xdf   :  { %586 = vrcp.f32 %v475_v14 }
  0xe0   :  { %588 = vrcp.f32 %v476_v63 }
  0xe9   :  { %v587_v15 = vpop.eup %586 }
  0xea   :  { %v589_v6 = vpop.eup %588 }
  0xeb   :  { %v483_v7 = vcombine.low %v587_v15, %v589_v6 }
  0xed   :  { %v490_v22 = vrot.slane %v483_v7, %v489_v5 }
  0xef   :  { %v491_v9 = vcombine.high %v490_v22, %v490_v22  ;;  %v498_v10 = vrot.slane %v490_v22, %v489_v5 }
  0xf1   :  { %v505_v11 = vrot.slane %v491_v9, %v489_v5  ;;  %v509_v16 = vrot.slane %v498_v10, %v508_v8  ;;  %v513_v12 = vrot.slane %v498_v10, %v512_v23 }
  0xf3   :  { %v517_v17 = vrot.slane %v505_v11, %v508_v8  ;;  %v521_v18 = vrot.slane %v505_v11, %v512_v23  ;;  %v522_v19 = vcombine.low %v509_v16, %v513_v12 }
  0xf5   :  { %v523_v20 = vcombine.low %v517_v17, %v521_v18  ;;  %v526_v44 = vmul.f32 %v522_v19, %v706_v0 }
  0xf7   :  { %v527_v21 = vmul.f32 %v523_v20, %v708_v1  ;;  %528 = vst [vmem:[#allocation7] sm:$0xff] %v526_v44 }
  0xf9   :  { %529 = vst [vmem:[#allocation7 + $0x8] sm:$0xff] %v527_v21 }
  0xfa   :  { %633 = shalt.err (!%p630_p1)
}
  0xfb   :  { %s634_s7 = scalar_lea.hbm %s1016_s2, 256 }
  0xfc   :  { %p635_p2 = scmp.ne.s32.totalorder %s1016_s2, %s634_s7  ;;  %p638_p3 = scmp.lt.u32.totalorder %s634_s7, %s1016_s2 }
  0xfe   :  { %p640_p4 = pnand %p638_p3, %p635_p2 }
 0x100   :  { %643 = shalt.err (!%p640_p4)
}
 0x101   :  { %541 = dma.vmem_to_hbm [thread:$0]  %s536_s3, 256, %s1016_s2, [#allocation6], %s652_s28, %s652_s28, %s653_s29  }
 0x102   :  { %648 = dma.done.wait [#allocation6], 256  }
 0x103   :  { %649 = vsyncadd [#allocation6], 4294967040 }
 0x104   :  { %545 = vsyncpa [#allocation5], 1 }
 0x105   :  { %546 = vsyncpa [#allocation6], 1 }

</bundles_post_ra>
